<compile_context>
chip_gen: v5e
topology: v5e:2x2
jax: 0.10.0
libtpu: 0.0.40
codegen_flags: <defaults>
</compile_context>

<pallas_src>
import functools

import jax
import jax.numpy as jnp
from jax.experimental import pallas as pl
from jax.experimental.pallas import tpu as pltpu


def _round_up(x, m):
    return ((x + m - 1) // m) * m


def _wcel_kernel(x_ref, t_ref, out_ref, a_acc, b_acc, s_acc, *,
                 n_actual, c_actual, tn, tc):
    ci = pl.program_id(0)   # class-tile index  ("parallel")
    ni = pl.program_id(1)   # batch-tile index  ("arbitrary" / reduction)

    @pl.when(ni == 0)
    def _init():
        a_acc[...] = jnp.zeros_like(a_acc)
        b_acc[...] = jnp.zeros_like(b_acc)
        s_acc[...] = jnp.zeros_like(s_acc)

    x = x_ref[...].astype(jnp.float32)   # (tn, tc)
    t = t_ref[...].astype(jnp.float32)   # (tn, tc)

    # Mask out padded rows / padded classes so they contribute nothing.
    row = ni * tn + jax.lax.broadcasted_iota(jnp.int32, (tn, tc), 0)
    col = ci * tc + jax.lax.broadcasted_iota(jnp.int32, (tn, tc), 1)
    mask = ((row < n_actual) & (col < c_actual)).astype(jnp.float32)

    # Numerically stable logsigmoid(x); logsigmoid(-x) = logsigmoid(x) - x
    # (one exp + one log1p per element instead of two of each).
    ls_pos = jnp.minimum(x, 0.0) - jnp.log1p(jnp.exp(-jnp.abs(x)))
    ls_neg = ls_pos - x

    tm = t * mask
    # Sublane-only (axis=0) reductions into the (1, tc) accumulators.
    a_acc[...] += jnp.sum(tm * ls_pos, axis=0, keepdims=True)
    b_acc[...] += jnp.sum((mask - tm) * ls_neg, axis=0, keepdims=True)
    s_acc[...] += jnp.sum(tm, axis=0, keepdims=True)

    @pl.when(ni == pl.num_programs(1) - 1)
    def _finalize():
        pos = s_acc[...] * (1.0 / n_actual)          # positive_ratio  (1, tc)
        neg = 1.0 - pos                              # negative_ratio  (1, tc)
        # Padded classes: S=A=B=0  ->  contribution is exactly 0.
        out_ref[...] = neg * a_acc[...] + pos * b_acc[...]


def w_cel(inputs, targets, *, vmem_tile_budget_bytes=32 * 1024 * 1024):
    """Pallas implementation of W_CEL.forward. inputs/targets: (N, C) arrays."""
    N, C = inputs.shape
    itemsize = max(jnp.dtype(inputs.dtype).itemsize,
                   jnp.dtype(targets.dtype).itemsize)
    # Sublane multiple by dtype (f32: 8, bf16: 16, int8/fp8: 32).
    sub = {4: 8, 2: 16, 1: 32}.get(itemsize, 8)

    # Lane-dense class tiling: pad C to a multiple of 128, cap tile at 2048.
    TC = min(_round_up(C, 128), 2048)
    C_pad = _round_up(C, TC)

    # Batch tile sized so 2 inputs x 2 (double buffer) x TN x TC fits budget.
    tn_budget = max(sub, vmem_tile_budget_bytes // (4 * TC * itemsize))
    tn_budget = min((tn_budget // sub) * sub, 1024)
    TN = max(sub, min(tn_budget, _round_up(N, sub)))
    N_pad = _round_up(N, TN)

    x_p = jnp.pad(inputs, ((0, N_pad - N), (0, C_pad - C)))
    t_p = jnp.pad(targets, ((0, N_pad - N), (0, C_pad - C)))

    n_c_tiles = C_pad // TC
    n_n_tiles = N_pad // TN

    kernel = functools.partial(
        _wcel_kernel, n_actual=N, c_actual=C, tn=TN, tc=TC)

    grid_spec = pltpu.PrefetchScalarGridSpec(
        num_scalar_prefetch=0,
        grid=(n_c_tiles, n_n_tiles),
        in_specs=[
            pl.BlockSpec((TN, TC), lambda ci, ni: (ni, ci)),
            pl.BlockSpec((TN, TC), lambda ci, ni: (ni, ci)),
        ],
        # Lane-dense per-class output; block constant across the reduction axis.
        out_specs=pl.BlockSpec((1, TC), lambda ci, ni: (0, ci)),
        scratch_shapes=[
            pltpu.VMEM((1, TC), jnp.float32),   # A_c accumulator
            pltpu.VMEM((1, TC), jnp.float32),   # B_c accumulator
            pltpu.VMEM((1, TC), jnp.float32),   # S_c accumulator
        ],
    )

    cost = pl.CostEstimate(
        flops=10 * N_pad * C_pad,
        transcendentals=2 * N_pad * C_pad,          # 1 exp + 1 log1p per elem
        bytes_accessed=2 * N_pad * C_pad * itemsize + 4 * C_pad,
    )

    per_class = pl.pallas_call(
        kernel,
        out_shape=jax.ShapeDtypeStruct((1, C_pad), jnp.float32),
        grid_spec=grid_spec,
        compiler_params=pltpu.CompilerParams(
            dimension_semantics=("parallel", "arbitrary"),
            vmem_limit_bytes=48 * 1024 * 1024,
        ),
        cost_estimate=cost,
    )(x_p, t_p)

    # Single tiny lane reduction over classes + normalization, done once.
    return -jnp.sum(per_class) / jnp.float32(N * C)


def _w_cel_ref(inputs, targets):
    # Pure-JAX reference for correctness check.
    x = inputs.astype(jnp.float32)
    t = targets.astype(jnp.float32)
    n, c = x.shape
    pos = jnp.sum(t, axis=0) / n
    neg = 1.0 - pos
    loss = -(t * jax.nn.log_sigmoid(x) * neg
             + (1.0 - t) * jax.nn.log_sigmoid(-x) * pos)
    return jnp.mean(jnp.sum(loss, axis=1) / c)


if __name__ == "__main__":
    key = jax.random.PRNGKey(0)
    k1, k2 = jax.random.split(key)

    N, C = 8, 32  # batch, num classes (multi-label logits / targets)
    logits = jax.random.normal(k1, (N, C), dtype=jnp.float32)
    targets = (jax.random.uniform(k2, (N, C)) > 0.5).astype(jnp.float32)

    out = w_cel(logits, targets)
    out = jax.block_until_ready(out)

    ref = _w_cel_ref(logits, targets)
    assert jnp.allclose(out, ref, atol=1e-5, rtol=1e-5), (out, ref)

    print("KERNEL_OK")
</pallas_src>

<mosaic_0001>
module attributes {stable_mosaic.version = 11 : i64} {
  func.func @_wcel_kernel(%arg0: i32, %arg1: i32, %arg2: memref<8x128xf32, #tpu.memory_space<vmem>>, %arg3: memref<8x128xf32, #tpu.memory_space<vmem>>, %arg4: memref<1x128xf32, #tpu.memory_space<vmem>>, %arg5: memref<1x128xf32, #tpu.memory_space<vmem>>, %arg6: memref<1x128xf32, #tpu.memory_space<vmem>>, %arg7: memref<1x128xf32, #tpu.memory_space<vmem>>) attributes {dimension_semantics = [#tpu.dimension_semantics<parallel>, #tpu.dimension_semantics<arbitrary>], iteration_bounds = array<i64: 1, 1>, scalar_prefetch = 0 : i64, scratch_operands = 3 : i64, tpu.core_type = #tpu.core_type<tc>, window_params = [{transform_indices = @transform_0, window_bounds = array<i64: 8, 128>}, {transform_indices = @transform_1, window_bounds = array<i64: 8, 128>}, {transform_indices = @transform_2, window_bounds = array<i64: 1, 128>}]} {
    %c0_i32 = arith.constant 0 : i32
    %0 = arith.cmpi eq, %arg1, %c0_i32 : i32
    %1 = arith.extui %0 : i1 to i32
    %c0_i32_0 = arith.constant 0 : i32
    %2 = arith.cmpi ne, %1, %c0_i32_0 : i32
    scf.if %2 {
      %cst_23 = arith.constant 0.000000e+00 : f32
      %51 = vector.broadcast %cst_23 : f32 to vector<1x128xf32>
      %c0_24 = arith.constant 0 : index
      %c0_25 = arith.constant 0 : index
      %52 = vector.load %arg5[%c0_24, %c0_25] : memref<1x128xf32, #tpu.memory_space<vmem>>, vector<1x128xf32>
      tpu.vector_store %arg5[%c0_24, %c0_25], %51 {strides = array<i32>} : memref<1x128xf32, #tpu.memory_space<vmem>>, vector<1x128xf32>,
      %cst_26 = arith.constant 0.000000e+00 : f32
      %53 = vector.broadcast %cst_26 : f32 to vector<1x128xf32>
      %c0_27 = arith.constant 0 : index
      %c0_28 = arith.constant 0 : index
      %54 = vector.load %arg6[%c0_27, %c0_28] : memref<1x128xf32, #tpu.memory_space<vmem>>, vector<1x128xf32>
      tpu.vector_store %arg6[%c0_27, %c0_28], %53 {strides = array<i32>} : memref<1x128xf32, #tpu.memory_space<vmem>>, vector<1x128xf32>,
      %cst_29 = arith.constant 0.000000e+00 : f32
      %55 = vector.broadcast %cst_29 : f32 to vector<1x128xf32>
      %c0_30 = arith.constant 0 : index
      %c0_31 = arith.constant 0 : index
      %56 = vector.load %arg7[%c0_30, %c0_31] : memref<1x128xf32, #tpu.memory_space<vmem>>, vector<1x128xf32>
      tpu.vector_store %arg7[%c0_30, %c0_31], %55 {strides = array<i32>} : memref<1x128xf32, #tpu.memory_space<vmem>>, vector<1x128xf32>,
    } else {
    }
    %c0 = arith.constant 0 : index
    %c0_1 = arith.constant 0 : index
    %3 = vector.load %arg2[%c0, %c0_1] : memref<8x128xf32, #tpu.memory_space<vmem>>, vector<8x128xf32>
    %c0_2 = arith.constant 0 : index
    %c0_3 = arith.constant 0 : index
    %4 = vector.load %arg3[%c0_2, %c0_3] : memref<8x128xf32, #tpu.memory_space<vmem>>, vector<8x128xf32>
    %c8_i32 = arith.constant 8 : i32
    %5 = arith.muli %arg1, %c8_i32 : i32
    %6 = tpu.iota {dimensions = array<i32: 0>} : vector<8x128xi32>
    %7 = vector.broadcast %5 : i32 to vector<8x128xi32>
    %8 = arith.addi %7, %6 : vector<8x128xi32>
    %c128_i32 = arith.constant 128 : i32
    %9 = arith.muli %arg0, %c128_i32 : i32
    %10 = tpu.iota {dimensions = array<i32: 1>} : vector<8x128xi32>
    %11 = vector.broadcast %9 : i32 to vector<8x128xi32>
    %12 = arith.addi %11, %10 : vector<8x128xi32>
    %c8_i32_4 = arith.constant 8 : i32
    %13 = vector.broadcast %c8_i32_4 : i32 to vector<8x128xi32>
    %14 = arith.cmpi slt, %8, %13 : vector<8x128xi32>
    %c32_i32 = arith.constant 32 : i32
    %15 = vector.broadcast %c32_i32 : i32 to vector<8x128xi32>
    %16 = arith.cmpi slt, %12, %15 : vector<8x128xi32>
    %17 = arith.andi %14, %16 : vector<8x128xi1>
    %18 = arith.extui %17 : vector<8x128xi1> to vector<8x128xi32>
    %19 = arith.sitofp %18 : vector<8x128xi32> to vector<8x128xf32>
    %cst = arith.constant 0.000000e+00 : f32
    %20 = vector.broadcast %cst : f32 to vector<8x128xf32>
    %21 = arith.minimumf %3, %20 : vector<8x128xf32>
    %22 = math.absf %3 : vector<8x128xf32>
    %cst_5 = arith.constant 0.000000e+00 : f32
    %23 = vector.broadcast %cst_5 : f32 to vector<8x128xf32>
    %24 = arith.subf %23, %22 : vector<8x128xf32>
    %25 = math.exp %24 : vector<8x128xf32>
    %26 = math.log1p %25 : vector<8x128xf32>
    %27 = arith.subf %21, %26 : vector<8x128xf32>
    %28 = arith.subf %27, %3 : vector<8x128xf32>
    %29 = arith.mulf %4, %19 : vector<8x128xf32>
    %c0_6 = arith.constant 0 : index
    %c0_7 = arith.constant 0 : index
    %30 = vector.load %arg5[%c0_6, %c0_7] : memref<1x128xf32, #tpu.memory_space<vmem>>, vector<1x128xf32>
    %31 = arith.mulf %29, %27 : vector<8x128xf32>
    %cst_8 = arith.constant dense<0.000000e+00> : vector<128xf32>
    %32 = vector.multi_reduction <add>, %31, %cst_8 [0] : vector<8x128xf32> to vector<128xf32>
    %33 = vector.shape_cast %32 : vector<128xf32> to vector<1x128xf32>
    %34 = arith.addf %30, %33 : vector<1x128xf32>
    %c0_9 = arith.constant 0 : index
    %c0_10 = arith.constant 0 : index
    %35 = vector.load %arg5[%c0_9, %c0_10] : memref<1x128xf32, #tpu.memory_space<vmem>>, vector<1x128xf32>
    tpu.vector_store %arg5[%c0_9, %c0_10], %34 {strides = array<i32>} : memref<1x128xf32, #tpu.memory_space<vmem>>, vector<1x128xf32>,
    %c0_11 = arith.constant 0 : index
    %c0_12 = arith.constant 0 : index
    %36 = vector.load %arg6[%c0_11, %c0_12] : memref<1x128xf32, #tpu.memory_space<vmem>>, vector<1x128xf32>
    %37 = arith.subf %19, %29 : vector<8x128xf32>
    %38 = arith.mulf %37, %28 : vector<8x128xf32>
    %cst_13 = arith.constant dense<0.000000e+00> : vector<128xf32>
    %39 = vector.multi_reduction <add>, %38, %cst_13 [0] : vector<8x128xf32> to vector<128xf32>
    %40 = vector.shape_cast %39 : vector<128xf32> to vector<1x128xf32>
    %41 = arith.addf %36, %40 : vector<1x128xf32>
    %c0_14 = arith.constant 0 : index
    %c0_15 = arith.constant 0 : index
    %42 = vector.load %arg6[%c0_14, %c0_15] : memref<1x128xf32, #tpu.memory_space<vmem>>, vector<1x128xf32>
    tpu.vector_store %arg6[%c0_14, %c0_15], %41 {strides = array<i32>} : memref<1x128xf32, #tpu.memory_space<vmem>>, vector<1x128xf32>,
    %c0_16 = arith.constant 0 : index
    %c0_17 = arith.constant 0 : index
    %43 = vector.load %arg7[%c0_16, %c0_17] : memref<1x128xf32, #tpu.memory_space<vmem>>, vector<1x128xf32>
    %cst_18 = arith.constant dense<0.000000e+00> : vector<128xf32>
    %44 = vector.multi_reduction <add>, %29, %cst_18 [0] : vector<8x128xf32> to vector<128xf32>
    %45 = vector.shape_cast %44 : vector<128xf32> to vector<1x128xf32>
    %46 = arith.addf %43, %45 : vector<1x128xf32>
    %c0_19 = arith.constant 0 : index
    %c0_20 = arith.constant 0 : index
    %47 = vector.load %arg7[%c0_19, %c0_20] : memref<1x128xf32, #tpu.memory_space<vmem>>, vector<1x128xf32>
    tpu.vector_store %arg7[%c0_19, %c0_20], %46 {strides = array<i32>} : memref<1x128xf32, #tpu.memory_space<vmem>>, vector<1x128xf32>,
    %c0_i32_21 = arith.constant 0 : i32
    %48 = arith.cmpi eq, %arg1, %c0_i32_21 : i32
    %49 = arith.extui %48 : i1 to i32
    %c0_i32_22 = arith.constant 0 : i32
    %50 = arith.cmpi ne, %49, %c0_i32_22 : i32
    scf.if %50 {
      %c0_23 = arith.constant 0 : index
      %c0_24 = arith.constant 0 : index
      %51 = vector.load %arg7[%c0_23, %c0_24] : memref<1x128xf32, #tpu.memory_space<vmem>>, vector<1x128xf32>
      %cst_25 = arith.constant 1.250000e-01 : f32
      %52 = vector.broadcast %cst_25 : f32 to vector<1x128xf32>
      %53 = arith.mulf %51, %52 : vector<1x128xf32>
      %cst_26 = arith.constant 1.000000e+00 : f32
      %54 = vector.broadcast %cst_26 : f32 to vector<1x128xf32>
      %55 = arith.subf %54, %53 : vector<1x128xf32>
      %c0_27 = arith.constant 0 : index
      %c0_28 = arith.constant 0 : index
      %56 = vector.load %arg5[%c0_27, %c0_28] : memref<1x128xf32, #tpu.memory_space<vmem>>, vector<1x128xf32>
      %57 = arith.mulf %55, %56 : vector<1x128xf32>
      %c0_29 = arith.constant 0 : index
      %c0_30 = arith.constant 0 : index
      %58 = vector.load %arg6[%c0_29, %c0_30] : memref<1x128xf32, #tpu.memory_space<vmem>>, vector<1x128xf32>
      %59 = arith.mulf %53, %58 : vector<1x128xf32>
      %60 = arith.addf %57, %59 : vector<1x128xf32>
      %c0_31 = arith.constant 0 : index
      %c0_32 = arith.constant 0 : index
      %61 = vector.load %arg4[%c0_31, %c0_32] : memref<1x128xf32, #tpu.memory_space<vmem>>, vector<1x128xf32>
      tpu.vector_store %arg4[%c0_31, %c0_32], %60 {strides = array<i32>} : memref<1x128xf32, #tpu.memory_space<vmem>>, vector<1x128xf32>,
    } else {
    }
    return
  }
  func.func @transform_0(%arg0: i32, %arg1: i32) -> (i32, i32) {
    %c0_i32 = arith.constant 0 : i32
    return %arg1, %arg0 : i32, i32
  }
  func.func @transform_1(%arg0: i32, %arg1: i32) -> (i32, i32) {
    %c0_i32 = arith.constant 0 : i32
    return %arg1, %arg0 : i32, i32
  }
  func.func @transform_2(%arg0: i32, %arg1: i32) -> (i32, i32) {
    %c0_i32 = arith.constant 0 : i32
    %c0_i32_0 = arith.constant 0 : i32
    return %c0_i32, %arg0 : i32, i32
  }
}

</mosaic_0001>

<bundles_post_ra>
// kernel: tpu_custom_call.1
= control target key start
LH: loop header
LB: loop body
LE: loop exit
PB: predicated region body
PF: predicated region fallthrough
CT: control target
= control target key end

     0   :  { %7 = vsyncpa [#allocation6], 0  ;;  %s256_s0 = inlined_call_operand.hbm [shape: f32[8,128], index: 0, kind: input, shape index: {}]   ;;  %s257_s1 = inlined_call_operand.hbm [shape: f32[8,128], index: 1, kind: input, shape index: {}]   ;;  %s258_s2 = inlined_call_operand.hbm [shape: f32[1,128], index: 2, kind: output, shape index: {}]  }
   0x1   :  { %8 = vsyncpa [#allocation9], 0 }
   0x2   :  { %9 = vsyncpa [#allocation7], 0  ;;  %s15_s11 = sshll.u32 %s256_s0, 4  ;;  %s228_s12 = smov [#allocation5]   ;;  %s16_s11 = int_to_ptr.hbm [resolvable:$true] %s15_s11 }
   0x3   :  { %s17_s13 = sshll.u32 %s228_s12, 4  ;;  %s26_s16 = sshll.u32 %s257_s1, 4  ;;  %s18_s13 = int_to_ptr.vmem [resolvable:$true] %s17_s13  ;;  %s27_s16 = int_to_ptr.hbm [resolvable:$true] %s26_s16 }
   0x4   :  { %20 = dma.hbm_to_vmem [thread:$0]  %s16_s11, 128, %s18_s13, [#allocation6]  }
   0x5   :  { %s229_s17 = smov [#allocation8]  }
   0x6   :  { %s28_s18 = sshll.u32 %s229_s17, 4  ;;  %s29_s18 = int_to_ptr.vmem [resolvable:$true] %s28_s18 }
   0x7   :  { %31 = dma.hbm_to_vmem [thread:$0]  %s27_s16, 128, %s29_s18, [#allocation9]  }
   0x8   :  { %222 = dma.done.wait [#allocation6], 128  }
   0x9   :  { %223 = vsyncadd [#allocation6], 4294967168 }
   0xa   :  { %224 = dma.done.wait [#allocation9], 128  }
   0xb   :  { %225 = vsyncadd [#allocation9], 4294967168  ;;  %v55_v0 = vlaneseq  ;;  %v230_v1 = vmov 0.0   ;;  %v47_v4 = vld [vmem:[#allocation5] sm:$0xff]  ;;  %v48_v5 = vld [vmem:[#allocation8] sm:$0xff]  ;;  %s231_s0 = smov [#allocation10]  }
   0xc   :  { %46 = vst [vmem:[#allocation4] sm:$0x1] %v230_v1  ;;  %v65_v6 = vand.u32 2147483647, %v47_v4  ;;  %v64_v25 = vmin.f32 %v47_v4, 0.0  ;;  %s128_s1 = sshll.u32 %s231_s0, 4  ;;  %s129_s1 = int_to_ptr.vmem [resolvable:$true] %s128_s1 }
   0xd   :  { %v56_v2 = vand.u32 127, %v55_v0  ;;  %44 = vst [vmem:[#allocation2] sm:$0x1] %v230_v1  ;;  %s130_s21 = sshll.u32 %s258_s2, 4  ;;  %s131_s21 = int_to_ptr.hbm [resolvable:$true] %s130_s21 }
   0xe   :  { %45 = vst [vmem:[#allocation3] sm:$0x1] %v230_v1  ;;  %v66_v8 = vsub.f32 0.0, %v65_v6 }
   0xf   :  { %vm60_vm0 = vcmp.lt.s32.totalorder %v56_v2, 32 }
  0x10   :  { %v141_v3 = vsel %vm60_vm0, 1.0, %v230_v1  ;;  %v67_v10 = vmul.f32 1.442695, %v66_v8 }
  0x11   :  { %v80_v7 = vmul.f32 %v141_v3, %v48_v5 }
  0x12   :  { %146 = vpow2.f32 %v67_v10 }
  0x13   :  { %v103_v9 = vrot.slane %v80_v7, 4  ;;  %v102_v15 = vld [vmem:[#allocation4] sm:$0x1]  ;;  %v92_v29 = vsub.f32 %v141_v3, %v80_v7 }
  0x14   :  { %v81_v42 = vld [vmem:[#allocation2] sm:$0x1] }
  0x15   :  { %v104_v11 = vadd.f32 %v103_v9, %v80_v7  ;;  %v91_v45 = vld [vmem:[#allocation3] sm:$0x1] }
  0x17   :  { %v105_v12 = vrot.slane %v104_v11, 2 }
  0x18   :  { %v147_v16 = vpop.eup %146 }
  0x19   :  { %v106_v13 = vadd.f32 %v105_v12, %v104_v11  ;;  %v69_v18 = vadd.f32 1.0, %v147_v16  ;;  %v72_v19 = vmul.f32 -0.5, %v147_v16  ;;  %v75_v22 = vand.u32 2147483647, %v147_v16 }
  0x1b   :  { %v107_v14 = vrot.slane %v106_v13, 1  ;;  %148 = vlog2.f32 %v69_v18  ;;  %v73_v21 = vadd.f32 1.0, %v72_v19  ;;  %vm76_vm1 = vcmp.lt.f32.partialorder %v75_v22, 0.0004427343 }
  0x1d   :  { %v108_v17 = vadd.f32 %v107_v14, %v106_v13  ;;  %v74_v23 = vmul.f32 %v147_v16, %v73_v21 }
  0x1f   :  { %v109_v20 = vadd.f32 %v108_v17, %v102_v15 }
  0x21   :  { %110 = vst [vmem:[#allocation4] sm:$0x1] %v109_v20  ;;  %v149_v24 = vpop.eup %148 }
  0x22   :  { %v71_v26 = vmul.f32 0.6931472, %v149_v24 }
  0x24   :  { %v77_v27 = vsel %vm76_vm1, %v74_v23, %v71_v26 }
  0x25   :  { %v78_v28 = vsub.f32 %v64_v25, %v77_v27 }
  0x27   :  { %v79_v30 = vsub.f32 %v78_v28, %v47_v4  ;;  %v82_v31 = vmul.f32 %v80_v7, %v78_v28 }
  0x28   :  { %v114_v46 = vld [vmem:[#allocation4] sm:$0x1] }
  0x29   :  { %v93_v32 = vmul.f32 %v92_v29, %v79_v30  ;;  %v83_v33 = vrot.slane %v82_v31, 4  ;;  %v115_v50 = vmul.f32 0.125, %v114_v46 }
  0x2b   :  { %v84_v34 = vadd.f32 %v83_v33, %v82_v31  ;;  %v94_v35 = vrot.slane %v93_v32, 4  ;;  %v116_v51 = vsub.f32 1.0, %v115_v50 }
  0x2d   :  { %v85_v36 = vrot.slane %v84_v34, 2  ;;  %v95_v37 = vadd.f32 %v94_v35, %v93_v32 }
  0x2f   :  { %v86_v38 = vadd.f32 %v85_v36, %v84_v34  ;;  %v96_v39 = vrot.slane %v95_v37, 2 }
  0x31   :  { %v87_v40 = vrot.slane %v86_v38, 1  ;;  %v97_v41 = vadd.f32 %v96_v39, %v95_v37 }
  0x33   :  { %v88_v43 = vadd.f32 %v87_v40, %v86_v38  ;;  %v98_v44 = vrot.slane %v97_v41, 1 }
  0x35   :  { %v89_v47 = vadd.f32 %v88_v43, %v81_v42  ;;  %v99_v48 = vadd.f32 %v98_v44, %v97_v41 }
  0x37   :  { %90 = vst [vmem:[#allocation2] sm:$0x1] %v89_v47  ;;  %v100_v49 = vadd.f32 %v99_v48, %v91_v45 }
  0x39   :  { %101 = vst [vmem:[#allocation3] sm:$0x1] %v100_v49 }
  0x3e   :  { %v117_v52 = vld [vmem:[#allocation2] sm:$0x1] }
  0x3f   :  { %v118_v53 = vmul.f32 %v117_v52, %v116_v51 }
  0x40   :  { %v119_v54 = vld [vmem:[#allocation3] sm:$0x1] }
  0x41   :  { %v120_v55 = vmul.f32 %v119_v54, %v115_v50 }
  0x43   :  { %v121_v56 = vadd.f32 %v120_v55, %v118_v53 }
  0x45   :  { %122 = vst [vmem:[#allocation10] sm:$0x1] %v121_v56 }
  0x46   :  { %133 = dma.vmem_to_hbm [thread:$0]  %s129_s1, 16, %s131_s21, [#allocation7]  }
  0x47   :  { %226 = dma.done.wait [#allocation7], 16  }
  0x48   :  { %227 = vsyncadd [#allocation7], 4294967280 }
  0x49   :  { %138 = vsyncpa [#allocation6], 1 }
  0x4a   :  { %139 = vsyncpa [#allocation9], 1 }
  0x4b   :  { %140 = vsyncpa [#allocation7], 1 }

</bundles_post_ra>
